<compile_context>
chip_gen: v6e
topology: v6e:2x2x1
jax: 0.10.0
libtpu: 0.0.40
codegen_flags: <defaults>
</compile_context>

<pallas_src>
import functools

import jax
import jax.numpy as jnp
import numpy as np
from jax.experimental import pallas as pl
from jax.experimental.pallas import tpu as pltpu

LANE = 128


def _round_up(x, m):
    return (x + m - 1) // m * m


# ------------------------------ Pallas kernel --------------------------------

def _two_stream_fused_kernel(p_ref, wc_ref, bc_ref, wh_ref, bh_ref, o_ref, *,
                             HW, CHUNK):
    """One grid step = (batch element b, stream s).  Conv3x3 + bias + ReLU +
    global-avg-pool + FC head, accumulated into the shared logits block.

    p_ref : (1, 1, HW, K)   bf16  im2col patches, K = 9 * Cin_padded
    wc_ref: (1, K, Coutp)   bf16  packed conv weights of stream s
    bc_ref: (1, 1, Coutp)   f32   conv bias of stream s
    wh_ref: (1, Coutp, Np)  bf16  head weights of stream s (pre-scaled by 0.5)
    bh_ref: (1, 1, Np)      f32   head bias of stream s (pre-scaled by 0.5)
    o_ref : (1, 1, Np)      f32   logits of batch b (resident across the s axis)
    """
    s = pl.program_id(1)

    @pl.when(s == 0)
    def _init():
        o_ref[...] = jnp.zeros_like(o_ref)

    wc = wc_ref[0]                              # (K, Coutp) bf16
    bias = bc_ref[0]                            # (1, Coutp) f32
    coutp = wc.shape[-1]

    # Chunked conv + ReLU + incremental pooled sum: only a (CHUNK, Coutp) f32
    # tile is live at a time instead of the full (HW, Coutp) accumulator.
    pooled = jnp.zeros((1, coutp), jnp.float32)
    for c in range(HW // CHUNK):                # static unroll, small count
        lhs = p_ref[0, 0, pl.ds(c * CHUNK, CHUNK), :]       # (CHUNK, K) bf16
        y = jnp.dot(lhs, wc, preferred_element_type=jnp.float32)
        y = jnp.maximum(y + bias, 0.0)          # bias pre-ReLU, per-chunk add
        pooled = pooled + jnp.sum(y, axis=0, keepdims=True)
    pooled = (pooled * (1.0 / HW)).astype(jnp.bfloat16)      # global avg pool

    # Fused FC head + two-stream mean: 0.5 is already folded into wh/bh, so
    # accumulating both streams' contributions yields 0.5 * (ya + yb).
    head = jnp.dot(pooled, wh_ref[0], preferred_element_type=jnp.float32) + bh_ref[0]
    o_ref[0] = o_ref[0] + head


# ------------------------------ Pallas wrapper --------------------------------

def pallas_two_stream(patches, wc, bc, wh, bh):
    """patches: (2, B, HW, K) bf16; wc: (2, K, Coutp) bf16; bc: (2, 1, Coutp) f32;
    wh: (2, Coutp, Np) bf16 (x0.5); bh: (2, 1, Np) f32 (x0.5) -> (B, 1, Np) f32."""
    n_streams, B, HW, K = patches.shape
    coutp = wc.shape[-1]
    ncls_p = wh.shape[-1]

    chunk = HW
    for cand in (128, 64, 32, 16, 8):
        if HW % cand == 0:
            chunk = cand
            break

    kernel = functools.partial(_two_stream_fused_kernel, HW=HW, CHUNK=chunk)
    return pl.pallas_call(
        kernel,
        out_shape=jax.ShapeDtypeStruct((B, 1, ncls_p), jnp.float32),
        grid=(B, n_streams),
        in_specs=[
            pl.BlockSpec((1, 1, HW, K), lambda b, s: (s, b, 0, 0)),
            pl.BlockSpec((1, K, coutp), lambda b, s: (s, 0, 0)),
            pl.BlockSpec((1, 1, coutp), lambda b, s: (s, 0, 0)),
            pl.BlockSpec((1, coutp, ncls_p), lambda b, s: (s, 0, 0)),
            pl.BlockSpec((1, 1, ncls_p), lambda b, s: (s, 0, 0)),
        ],
        # Output block index is constant across the stream axis -> resident
        # accumulator; stream axis must be "arbitrary", batch axis is parallel.
        out_specs=pl.BlockSpec((1, 1, ncls_p), lambda b, s: (b, 0, 0)),
        compiler_params=pltpu.CompilerParams(
            dimension_semantics=("parallel", "arbitrary")),
    )(patches, wc, bc, wh, bh)


# ------------------------------ prep (hoisted) --------------------------------

def _prep_stream_weights(params, cin_pad, cout_pad, ncls_pad):
    """Call-invariant weight prep. Run ONCE outside the jitted forward."""
    cout, cin = params["conv_w"].shape[:2]
    # (Cout, Cin, 3, 3) -> tap-major (3, 3, Cin, Cout) -> packed (9*Cin_pad, Cout_pad)
    w = jnp.transpose(params["conv_w"], (2, 3, 1, 0))
    w = jnp.pad(w, ((0, 0), (0, 0), (0, cin_pad - cin), (0, cout_pad - cout)))
    wc = w.reshape(9 * cin_pad, cout_pad).astype(jnp.bfloat16)
    bc = jnp.pad(params["conv_b"], (0, cout_pad - cout)).reshape(1, cout_pad)
    bc = bc.astype(jnp.float32)

    ch, nc = params["fc_w"].shape
    # Fold the 0.5 two-stream mean into the head weights/bias (exact: power of 2).
    wh = jnp.pad(0.5 * params["fc_w"],
                 ((0, cout_pad - ch), (0, ncls_pad - nc))).astype(jnp.bfloat16)
    bh = (0.5 * jnp.pad(params["fc_b"], (0, ncls_pad - nc))).reshape(1, ncls_pad)
    bh = bh.astype(jnp.float32)
    return wc, bc, wh, bh


def _make_patches(x_nchw, cin_pad):
    """NCHW -> im2col patches (B, HW, 9*cin_pad) bf16, tap order (dy, dx), channel minor."""
    B, cin, H, W = x_nchw.shape
    x = jnp.transpose(x_nchw, (0, 2, 3, 1)).astype(jnp.float32)     # NHWC
    x = jnp.pad(x, ((0, 0), (1, 1), (1, 1), (0, cin_pad - cin)))    # 'same' + channel pad
    taps = [x[:, dy:dy + H, dx:dx + W, :] for dy in range(3) for dx in range(3)]
    p = jnp.stack(taps, axis=3)                                     # (B, H, W, 9, cin_pad)
    return p.reshape(B, H * W, 9 * cin_pad).astype(jnp.bfloat16)


def two_stream_forward(spatial_input, temporal_input, weights, *, num_classes):
    wc, bc, wh, bh = weights                 # stacked (2, ...) prepped weights
    cin_pad = wc.shape[1] // 9
    p_sp = _make_patches(spatial_input, cin_pad)
    p_tp = _make_patches(temporal_input, cin_pad)
    patches = jnp.stack([p_sp, p_tp], axis=0)          # (2, B, HW, 9*cin_pad)
    out = pallas_two_stream(patches, wc, bc, wh, bh)   # (B, 1, Np) f32
    return out[:, 0, :num_classes]                     # single un-pad slice


# ----------------------------- pure-JAX reference ---------------------------
# Mirrors the kernel numerics (bf16 MXU operands, f32 accumulation).

def _stream_pooled_reference(x_nchw, params):
    x = jnp.transpose(x_nchw, (0, 2, 3, 1))
    B, H, W, _ = x.shape
    Cout = params["conv_w"].shape[0]
    xp = jnp.pad(x, ((0, 0), (1, 1), (1, 1), (0, 0)))
    w = jnp.transpose(params["conv_w"], (2, 3, 1, 0)).astype(jnp.bfloat16)
    acc = jnp.broadcast_to(params["conv_b"], (B, H, W, Cout)).astype(jnp.float32)
    for dy in range(3):
        for dx in range(3):
            xs = xp[:, dy:dy + H, dx:dx + W, :].astype(jnp.bfloat16)
            acc = acc + jnp.einsum("bhwc,co->bhwo", xs, w[dy, dx],
                                   preferred_element_type=jnp.float32)
    acc = jnp.maximum(acc, 0.0)
    return jnp.mean(acc.reshape(B, H * W, Cout), axis=1)


def _two_stream_reference(sp_x, tp_x, sp_params, tp_params):
    pa = _stream_pooled_reference(sp_x, sp_params).astype(jnp.bfloat16)
    pb = _stream_pooled_reference(tp_x, tp_params).astype(jnp.bfloat16)
    ya = jnp.dot(pa, sp_params["fc_w"].astype(jnp.bfloat16),
                 preferred_element_type=jnp.float32) + sp_params["fc_b"]
    yb = jnp.dot(pb, tp_params["fc_w"].astype(jnp.bfloat16),
                 preferred_element_type=jnp.float32) + tp_params["fc_b"]
    return 0.5 * (ya + yb)


# ---------------------------------- main -------------------------------------

if __name__ == "__main__":
    num_classes = 8
    B, H, W = 2, 16, 16
    C_spatial = 3       # RGB frame for the spatial stream
    C_temporal = 10     # stacked optical-flow channels for the temporal stream
    C_hidden = 16

    key = jax.random.PRNGKey(0)
    ks = jax.random.split(key, 10)

    def init_stream(k0, k1, k2, k3, cin):
        return {
            "conv_w": 0.1 * jax.random.normal(k0, (C_hidden, cin, 3, 3), jnp.float32),
            "conv_b": 0.1 * jax.random.normal(k1, (C_hidden,), jnp.float32),
            "fc_w": 0.1 * jax.random.normal(k2, (C_hidden, num_classes), jnp.float32),
            "fc_b": 0.1 * jax.random.normal(k3, (num_classes,), jnp.float32),
        }

    sp_params = init_stream(ks[0], ks[1], ks[2], ks[3], C_spatial)
    tp_params = init_stream(ks[4], ks[5], ks[6], ks[7], C_temporal)

    spatial_input = jax.random.normal(ks[8], (B, C_spatial, H, W), jnp.float32)
    temporal_input = jax.random.normal(ks[9], (B, C_temporal, H, W), jnp.float32)

    # ---- hoisted, call-invariant weight prep (done once, outside jit) ----
    CIN_PAD = _round_up(max(C_spatial, C_temporal), 8)
    COUT_PAD = _round_up(max(C_hidden, LANE), LANE)
    NCLS_PAD = _round_up(max(num_classes, LANE), LANE)
    prep_sp = _prep_stream_weights(sp_params, CIN_PAD, COUT_PAD, NCLS_PAD)
    prep_tp = _prep_stream_weights(tp_params, CIN_PAD, COUT_PAD, NCLS_PAD)
    weights = tuple(jnp.stack([a, b], axis=0) for a, b in zip(prep_sp, prep_tp))

    forward = jax.jit(functools.partial(two_stream_forward, num_classes=num_classes))
    out = forward(spatial_input, temporal_input, weights)
    out = jax.block_until_ready(out)
    assert out.shape == (B, num_classes)

    ref = _two_stream_reference(spatial_input, temporal_input, sp_params, tp_params)
    # Tolerance covers only accumulation-order / bf16 rounding-boundary noise;
    # the reference uses the same bf16-operand / f32-accumulation numerics.
    # (Against the original float32 PyTorch model the tolerance would need to
    # be wider.)
    np.testing.assert_allclose(np.asarray(out), np.asarray(ref),
                               rtol=1e-3, atol=1e-3)
    print("KERNEL_OK")
</pallas_src>

<mosaic_0001>
module attributes {stable_mosaic.version = 11 : i64} {
  func.func @_two_stream_fused_kernel(%arg0: i32, %arg1: i32, %arg2: memref<1x1x256x144xbf16, #tpu.memory_space<vmem>>, %arg3: memref<1x144x128xbf16, #tpu.memory_space<vmem>>, %arg4: memref<1x1x128xf32, #tpu.memory_space<vmem>>, %arg5: memref<1x128x128xbf16, #tpu.memory_space<vmem>>, %arg6: memref<1x1x128xf32, #tpu.memory_space<vmem>>, %arg7: memref<1x1x128xf32, #tpu.memory_space<vmem>>) attributes {dimension_semantics = [#tpu.dimension_semantics<parallel>, #tpu.dimension_semantics<arbitrary>], iteration_bounds = array<i64: 2, 2>, scalar_prefetch = 0 : i64, scratch_operands = 0 : i64, tpu.core_type = #tpu.core_type<tc>, window_params = [{transform_indices = @transform_0, window_bounds = array<i64: 1, 1, 256, 144>}, {transform_indices = @transform_1, window_bounds = array<i64: 1, 144, 128>}, {transform_indices = @transform_2, window_bounds = array<i64: 1, 1, 128>}, {transform_indices = @transform_3, window_bounds = array<i64: 1, 128, 128>}, {transform_indices = @transform_4, window_bounds = array<i64: 1, 1, 128>}, {transform_indices = @transform_5, window_bounds = array<i64: 1, 1, 128>}]} {
    %c0_i32 = arith.constant 0 : i32
    %0 = arith.cmpi eq, %arg1, %c0_i32 : i32
    %1 = arith.extui %0 : i1 to i32
    %c0_i32_0 = arith.constant 0 : i32
    %2 = arith.cmpi ne, %1, %c0_i32_0 : i32
    scf.if %2 {
      %cst_33 = arith.constant 0.000000e+00 : f32
      %43 = vector.broadcast %cst_33 : f32 to vector<1x1x128xf32>
      %c0_34 = arith.constant 0 : index
      %c0_35 = arith.constant 0 : index
      %c0_36 = arith.constant 0 : index
      %44 = vector.load %arg7[%c0_34, %c0_35, %c0_36] : memref<1x1x128xf32, #tpu.memory_space<vmem>>, vector<1x1x128xf32>
      tpu.vector_store %arg7[%c0_34, %c0_35, %c0_36], %43 {strides = array<i32>} : memref<1x1x128xf32, #tpu.memory_space<vmem>>, vector<1x1x128xf32>,
    } else {
    }
    %c0 = arith.constant 0 : index
    %c0_1 = arith.constant 0 : index
    %c0_2 = arith.constant 0 : index
    %3 = vector.load %arg3[%c0, %c0_1, %c0_2] : memref<1x144x128xbf16, #tpu.memory_space<vmem>>, vector<1x144x128xbf16>
    %4 = vector.shape_cast %3 : vector<1x144x128xbf16> to vector<144x128xbf16>
    %c0_3 = arith.constant 0 : index
    %c0_4 = arith.constant 0 : index
    %c0_5 = arith.constant 0 : index
    %5 = vector.load %arg4[%c0_3, %c0_4, %c0_5] : memref<1x1x128xf32, #tpu.memory_space<vmem>>, vector<1x1x128xf32>
    %6 = vector.shape_cast %5 : vector<1x1x128xf32> to vector<1x128xf32>
    %cst = arith.constant 0.000000e+00 : f32
    %7 = vector.broadcast %cst : f32 to vector<1x128xf32>
    %c0_6 = arith.constant 0 : index
    %c0_7 = arith.constant 0 : index
    %c0_8 = arith.constant 0 : index
    %c0_9 = arith.constant 0 : index
    %8 = vector.load %arg2[%c0_6, %c0_7, %c0_8, %c0_9] : memref<1x1x256x144xbf16, #tpu.memory_space<vmem>>, vector<1x1x128x144xbf16>
    %9 = vector.shape_cast %8 : vector<1x1x128x144xbf16> to vector<128x144xbf16>
    %cst_10 = arith.constant dense<0.000000e+00> : vector<128x128xf32>
    %10 = tpu.matmul %9, %4, %cst_10 {dimension_numbers = #tpu.dot_dimension_numbers<[1], [0], [0], [1], [0, 0, 1, 1], [], []>} : vector<128x144xbf16>, vector<144x128xbf16>, vector<128x128xf32> -> vector<128x128xf32>
    %11 = vector.broadcast %6 : vector<1x128xf32> to vector<128x128xf32>
    %12 = arith.addf %10, %11 : vector<128x128xf32>
    %cst_11 = arith.constant 0.000000e+00 : f32
    %13 = vector.broadcast %cst_11 : f32 to vector<128x128xf32>
    %14 = arith.maximumf %12, %13 : vector<128x128xf32>
    %cst_12 = arith.constant dense<0.000000e+00> : vector<128xf32>
    %15 = vector.multi_reduction <add>, %14, %cst_12 [0] : vector<128x128xf32> to vector<128xf32>
    %16 = vector.shape_cast %15 : vector<128xf32> to vector<1x128xf32>
    %17 = arith.addf %7, %16 : vector<1x128xf32>
    %c0_13 = arith.constant 0 : index
    %c0_14 = arith.constant 0 : index
    %c128 = arith.constant 128 : index
    %c0_15 = arith.constant 0 : index
    %18 = vector.load %arg2[%c0_13, %c0_14, %c128, %c0_15] : memref<1x1x256x144xbf16, #tpu.memory_space<vmem>>, vector<1x1x128x144xbf16>
    %19 = vector.shape_cast %18 : vector<1x1x128x144xbf16> to vector<128x144xbf16>
    %cst_16 = arith.constant dense<0.000000e+00> : vector<128x128xf32>
    %20 = tpu.matmul %19, %4, %cst_16 {dimension_numbers = #tpu.dot_dimension_numbers<[1], [0], [0], [1], [0, 0, 1, 1], [], []>} : vector<128x144xbf16>, vector<144x128xbf16>, vector<128x128xf32> -> vector<128x128xf32>
    %21 = vector.broadcast %6 : vector<1x128xf32> to vector<128x128xf32>
    %22 = arith.addf %20, %21 : vector<128x128xf32>
    %cst_17 = arith.constant 0.000000e+00 : f32
    %23 = vector.broadcast %cst_17 : f32 to vector<128x128xf32>
    %24 = arith.maximumf %22, %23 : vector<128x128xf32>
    %cst_18 = arith.constant dense<0.000000e+00> : vector<128xf32>
    %25 = vector.multi_reduction <add>, %24, %cst_18 [0] : vector<128x128xf32> to vector<128xf32>
    %26 = vector.shape_cast %25 : vector<128xf32> to vector<1x128xf32>
    %27 = arith.addf %17, %26 : vector<1x128xf32>
    %cst_19 = arith.constant 3.906250e-03 : f32
    %28 = vector.broadcast %cst_19 : f32 to vector<1x128xf32>
    %29 = arith.mulf %27, %28 : vector<1x128xf32>
    %30 = arith.truncf %29 : vector<1x128xf32> to vector<1x128xbf16>
    %c0_20 = arith.constant 0 : index
    %c0_21 = arith.constant 0 : index
    %c0_22 = arith.constant 0 : index
    %31 = vector.load %arg5[%c0_20, %c0_21, %c0_22] : memref<1x128x128xbf16, #tpu.memory_space<vmem>>, vector<1x128x128xbf16>
    %32 = vector.shape_cast %31 : vector<1x128x128xbf16> to vector<128x128xbf16>
    %cst_23 = arith.constant dense<0.000000e+00> : vector<1x128xf32>
    %33 = tpu.matmul %30, %32, %cst_23 {dimension_numbers = #tpu.dot_dimension_numbers<[1], [0], [0], [1], [0, 0, 1, 1], [], []>} : vector<1x128xbf16>, vector<128x128xbf16>, vector<1x128xf32> -> vector<1x128xf32>
    %c0_24 = arith.constant 0 : index
    %c0_25 = arith.constant 0 : index
    %c0_26 = arith.constant 0 : index
    %34 = vector.load %arg6[%c0_24, %c0_25, %c0_26] : memref<1x1x128xf32, #tpu.memory_space<vmem>>, vector<1x1x128xf32>
    %35 = vector.shape_cast %34 : vector<1x1x128xf32> to vector<1x128xf32>
    %36 = arith.addf %33, %35 : vector<1x128xf32>
    %c0_27 = arith.constant 0 : index
    %c0_28 = arith.constant 0 : index
    %c0_29 = arith.constant 0 : index
    %37 = vector.load %arg7[%c0_27, %c0_28, %c0_29] : memref<1x1x128xf32, #tpu.memory_space<vmem>>, vector<1x1x128xf32>
    %38 = vector.shape_cast %37 : vector<1x1x128xf32> to vector<1x128xf32>
    %39 = arith.addf %38, %36 : vector<1x128xf32>
    %c0_30 = arith.constant 0 : index
    %c0_31 = arith.constant 0 : index
    %c0_32 = arith.constant 0 : index
    %40 = vector.load %arg7[%c0_30, %c0_31, %c0_32] : memref<1x1x128xf32, #tpu.memory_space<vmem>>, vector<1x1x128xf32>
    %41 = vector.shape_cast %40 : vector<1x1x128xf32> to vector<1x128xf32>
    %42 = vector.shape_cast %39 : vector<1x128xf32> to vector<1x1x128xf32>
    tpu.vector_store %arg7[%c0_30, %c0_31, %c0_32], %42 {strides = array<i32>} : memref<1x1x128xf32, #tpu.memory_space<vmem>>, vector<1x1x128xf32>,
    return
  }
  func.func @transform_0(%arg0: i32, %arg1: i32) -> (i32, i32, i32, i32) {
    %c0_i32 = arith.constant 0 : i32
    %c0_i32_0 = arith.constant 0 : i32
    %c0_i32_1 = arith.constant 0 : i32
    return %arg1, %arg0, %c0_i32, %c0_i32_0 : i32, i32, i32, i32
  }
  func.func @transform_1(%arg0: i32, %arg1: i32) -> (i32, i32, i32) {
    %c0_i32 = arith.constant 0 : i32
    %c0_i32_0 = arith.constant 0 : i32
    %c0_i32_1 = arith.constant 0 : i32
    return %arg1, %c0_i32, %c0_i32_0 : i32, i32, i32
  }
  func.func @transform_2(%arg0: i32, %arg1: i32) -> (i32, i32, i32) {
    %c0_i32 = arith.constant 0 : i32
    %c0_i32_0 = arith.constant 0 : i32
    %c0_i32_1 = arith.constant 0 : i32
    return %arg1, %c0_i32, %c0_i32_0 : i32, i32, i32
  }
  func.func @transform_3(%arg0: i32, %arg1: i32) -> (i32, i32, i32) {
    %c0_i32 = arith.constant 0 : i32
    %c0_i32_0 = arith.constant 0 : i32
    %c0_i32_1 = arith.constant 0 : i32
    return %arg1, %c0_i32, %c0_i32_0 : i32, i32, i32
  }
  func.func @transform_4(%arg0: i32, %arg1: i32) -> (i32, i32, i32) {
    %c0_i32 = arith.constant 0 : i32
    %c0_i32_0 = arith.constant 0 : i32
    %c0_i32_1 = arith.constant 0 : i32
    return %arg1, %c0_i32, %c0_i32_0 : i32, i32, i32
  }
  func.func @transform_5(%arg0: i32, %arg1: i32) -> (i32, i32, i32) {
    %c0_i32 = arith.constant 0 : i32
    %c0_i32_0 = arith.constant 0 : i32
    %c0_i32_1 = arith.constant 0 : i32
    return %arg0, %c0_i32, %c0_i32_0 : i32, i32, i32
  }
}

</mosaic_0001>

<bundles_post_ra>
// kernel: two_stream_forward.1
= control target key start
LH: loop header
LB: loop body
LE: loop exit
PB: predicated region body
PF: predicated region fallthrough
CT: control target
= control target key end

     0   :  { %10 = vsyncpa [#allocation3], 0  ;;  %s1795_s0 = inlined_call_operand.vmem [shape: bf16[2,2,256,144], index: 0, kind: input, shape index: {}]   ;;  %s1796_s1 = inlined_call_operand.vmem [shape: bf16[2,144,128], index: 1, kind: input, shape index: {}]   ;;  %s1797_s2 = inlined_call_operand.vmem [shape: f32[2,1,128], index: 2, kind: input, shape index: {}]   ;;  %s1798_s3 = inlined_call_operand.vmem [shape: bf16[2,128,128], index: 3, kind: input, shape index: {}]   ;;  %s1799_s4 = inlined_call_operand.vmem [shape: f32[2,1,128], index: 4, kind: input, shape index: {}]   ;;  %s1800_s5 = inlined_call_operand.hbm [shape: f32[2,1,128], index: 5, kind: output, shape index: {}]  }
   0x1   :  { %12 = vsyncpa [#allocation3 + $0x1], 0  ;;  %s1517_s18 = smov 0   ;;  %s1519_s19 = smov 0  }
   0x2   :  { %s1521_s20 = smov 0   ;;  %s1523_s21 = smov 0  }
   0x3   :  { %s1525_s22 = smov 0   ;;  %s1527_s23 = smov 0  }
   0x4   :  { %s1529_s24 = smov 0   ;;  %s1531_s25 = smov 0  }
   0x5 LB: > { %1806 = sst [smem:[#allocation5_spill]] %s1460_s20  ;;  %s1136_s26 = sadd.s32 4294967295, %s1480_s25   ;;  %s1480_s25 = sphi %s1531_s25, %s18_s25   ;;  %s1476_s24 = sphi %s1529_s24, %s1823_s24   ;;  %s1472_s23 = sphi %s1527_s23, %s1822_s23   ;;  %s1468_s22 = sphi %s1525_s22, %s1821_s22   ;;  %s1464_s21 = sphi %s1523_s21, %s1820_s21   ;;  %s1460_s20 = sphi %s1521_s20, %s1819_s20   ;;  %s1456_s19 = sphi %s1519_s19, %s1825_s19   ;;  %s1452_s18 = sphi %s1517_s18, %s1824_s18  }
   0x6   : > { %1807 = sst [smem:[#allocation6_spill]] %s1472_s23  ;;  %s1137_s27 = sadd.s32 4294967294, %s1480_s25  }
   0x7   : > { %1808 = sst [smem:[#allocation7_spill]] %s1476_s24  ;;  %s27_s28 = sadd.s32 1, %s1472_s23 }
   0x8   : > { %p28_p0 = scmp.ge.s32.totalorder %s27_s28, 2  ;;  %s30_s29 = sadd.s32 1, %s1476_s24 }
   0x9   : > { %p179_p1 = scmp.ne.s32.totalorder %s1460_s20, %s1456_s19  ;;  %p180_p2 = scmp.eq.s32.totalorder %s1136_s26, 3 }
   0xa   : > { %s1827_s28 = smov (%p28_p0, %s27_s28), 0  ;;  %s1829_s29 = smov (!%p28_p0, %s30_s29), %s1476_s24 }
   0xb   : > { %1809 = sst [smem:[#allocation8_spill]] %s1827_s28  ;;  %p1566_p3 = por %p180_p2, %p179_p1 }
   0xc   : > { %p185_p4 = scmp.ne.s32.totalorder %s1456_s19, %s1452_s18  ;;  %p32_p5 = scmp.ge.s32.totalorder %s1829_s29, 2 }
   0xd   : > { %p186_p6 = scmp.eq.s32.totalorder %s1137_s27, 3  ;;  %p1140_p7 = scmp.ge.s32.totalorder %s1480_s25, 1 }
   0xe   : > { %p244_p8 = scmp.lt.s32.totalorder %s1480_s25, 5  ;;  %s1831_s29 = smov (%p32_p5, %s1829_s29), 0 }
   0xf   : > { %1811 = sst [smem:[#allocation9_spill]] %s1831_s29  ;;  %p1576_p9 = por %p186_p6, %p185_p4 }
  0x10   : > { %p245_p10 = pnand %p1140_p7, %p244_p8  ;;  %s166_s7 = ssub.s32 %s1476_s24, %s1831_s29 }
  0x11   : > { %s1812_s6 = scalar_select %p1576_p9, 1, 0 }
  0x12   : > { %s169_s8 = sadd.s32 1, %s1460_s20  ;;  %p167_p11 = scmp.eq.s32.totalorder %s166_s7, 0 }
  0x13   : > { %1813 = sst [smem:[#allocation10_spill]] %s1812_s6  ;;  %248 = sbr.rel (%p245_p10) target bundleno = 564 (0x234), region = 40 }
  0x14   : > { %s1584_s9 = scalar_select %p167_p11, %s1460_s20, %s169_s8  }
  0x15   : > { %p291_p12 = scmp.lt.s32.totalorder (!%p245_p10), %s1464_s21, 1  ;;  %p293_p13 = scmp.lt.s32.totalorder (!%p245_p10), %s1468_s22, 1 }
  0x16   : > { %1814 = sst [smem:[#allocation11_spill]] %s1584_s9  ;;  %p1147_p0 = scmp.ne.s32.totalorder (!%p245_p10), %s1464_s21, 0 }
  0x18   : > { %s1590_s11 = scalar_select %p291_p12, %s1464_s21, 1 }
  0x19   : > { %s294_s12 = scalar_select %p293_p13, %s1468_s22, 1 }
  0x1a   : > { %s1142_s13 = sshll.u32 %s1590_s11, 7  ;;  %s1247_s14 = smul.u32 72, %s1590_s11 }
  0x1b   : > { %s1141_s15 = sshll.u32 %s294_s12, 6  ;;  %s307_s26 = scalar_lea.vmem %s1797_s2, %s1590_s11 }
  0x1c   : > { %s297_s27 = sadd.s32 %s1142_s13, %s1141_s15  ;;  %s1602_s10 = scalar_lea.vmem %s1796_s1, %s1247_s14 }
  0x1d   : > { %s1143_s29 = sshll.u32 %s297_s27, 2  ;;  %s1217_s28 = sshll.u32 %s1590_s11, 6 }
  0x1e   : > { %s1608_s9 = scalar_lea.vmem %s1795_s0, %s1143_s29  ;;  %s1613_s12 = scalar_lea.vmem %s1798_s3, %s1217_s28 }
  0x1f   : > { %s315_s13 = scalar_lea.vmem %s1799_s4, %s1590_s11  ;;  %s1815_s15 = sand.u32 1, %s1456_s19  }
  0x20   : > { %s1621_s7 = scalar_lea.vmem [#allocation2], %s1815_s15  ;;  %320 = sbr.rel (%p1147_p0) target bundleno = 39 (0x27), region = 44 }
  0x25   : > { %v1482_v0 = vmov 0.0  }
  0x26   : > { %321 = vst [vmem:[%s1621_s7] sm:$0x1] %v1482_v0 }
  0x27 PF: > { %v1323_v1 = vld [vmem:[%s1602_s10 + $0x38] sm:$0xff]   ;;  %v1483_v2 = vmov 0   ;;  %v1324_v3 = vld [vmem:[%s1602_s10 + $0x30] sm:$0xff]   ;;  %v1325_v4 = vld [vmem:[%s1602_s10 + $0x28] sm:$0xff]   ;;  %vm489_vm0 = vcmask 130048   ;;  %v1484_v44 = vmov 0.0  }
  0x28   : > { %514 = vmatprep.subr.bf16.mxu0 %v1483_v2  ;;  %761 = vmatprep.subr.bf16.mxu1 %v1483_v2  ;;  %v1326_v5 = vld [vmem:[%s1602_s10 + $0x20] sm:$0xff]   ;;  %v1327_v8 = vld [vmem:[%s1602_s10 + $0x18] sm:$0xff]   ;;  %v1328_v9 = vld [vmem:[%s1602_s10 + $0x10] sm:$0xff]   ;;  %vm1485_vm1 = vmmov 0   ;;  %s1214_s28 = sshll.u32 %s1468_s22, 4  ;;  %s1019_s29 = sshll.u32 %s1621_s7, 4  ;;  %s1742_s29 = int_to_ptr.vmem [resolvable:$true] %s1019_s29 }
  0x29   : > { %515 = vmatpush1.bf16.msra.mxu0 %v1323_v1  ;;  %762 = vmatpush1.bf16.msra.mxu1 %v1323_v1  ;;  %v1334_v6 = vld [vmem:[%s1608_s9 + $0x4] ss:$8 sps:$4 sm:$0xff]   ;;  %v1332_v13 = vld [vmem:[%s1608_s9] ss:$8 sps:$4 sm:$0xff]   ;;  %v1338_v15 = vld [vmem:[%s1608_s9 + $0x14] ss:$8 sps:$4 sm:$0xff]  }
  0x2a   : > { %516 = vmatprep.subr.bf16.mxu0 %v1483_v2  ;;  %763 = vmatprep.subr.bf16.mxu1 %v1483_v2  ;;  %v1337_v7 = vld [vmem:[%s1608_s9 + $0x84] ss:$8 sps:$4 sm:$0xff]   ;;  %v1335_v14 = vld [vmem:[%s1608_s9 + $0x80] ss:$8 sps:$4 sm:$0xff]   ;;  %v1340_v16 = vld [vmem:[%s1608_s9 + $0x94] ss:$8 sps:$4 sm:$0xff]  }
  0x2b   : > { %1174 = vmatprep.mubr.msk.bf16.mxu0 %vm489_vm0, %v1334_v6  ;;  %1198 = vmatprep.mubr.msk.bf16.mxu1 %vm489_vm0, %v1337_v7  ;;  %v1329_v10 = vld [vmem:[%s1602_s10 + $0x8] sm:$0xff]   ;;  %v1330_v11 = vld [vmem:[%s1602_s10] sm:$0xff]   ;;  %v1342_v17 = vld [vmem:[%s1608_s9 + $0x10] ss:$8 sps:$4 sm:$0xff]   ;;  %s1816_s11 = sand.u32 1, %s1456_s19   ;;  %s1388_s22 = scalar_lea.vmem %s1742_s29, 16 }
  0x2c   : > { %v1331_v12 = vld [vmem:[%s1602_s10 + $0x40] sm:$0xff]   ;;  %v1343_v18 = vld [vmem:[%s1608_s9 + $0x90] ss:$8 sps:$4 sm:$0xff]   ;;  %v1350_v23 = vld [vmem:[%s1608_s9 + $0x34] ss:$8 sps:$4 sm:$0xff]   ;;  %s1740_s10 = scalar_lea.hbm %s1800_s5, %s1214_s28  ;;  %s1007_s14 = scalar_lea.sflag [#allocation3], %s1816_s11 }
  0x2d   : > { %517 = vmatpush1.bf16.msra.mxu0 %v1324_v3  ;;  %764 = vmatpush1.bf16.msra.mxu1 %v1324_v3  ;;  %v1344_v19 = vld [vmem:[%s1608_s9 + $0x24] ss:$8 sps:$4 sm:$0xff]   ;;  %v1348_v21 = vld [vmem:[%s1608_s9 + $0x20] ss:$8 sps:$4 sm:$0xff]   ;;  %v1352_v24 = vld [vmem:[%s1608_s9 + $0xb4] ss:$8 sps:$4 sm:$0xff]   ;;  %p1389_p1 = scmp.ne.s32.totalorder %s1742_s29, %s1388_s22 }
  0x2e   : > { %518 = vmatprep.subr.bf16.mxu0 %v1483_v2  ;;  %765 = vmatprep.subr.bf16.mxu1 %v1483_v2  ;;  %v1346_v20 = vld [vmem:[%s1608_s9 + $0xa4] ss:$8 sps:$4 sm:$0xff]   ;;  %v1349_v22 = vld [vmem:[%s1608_s9 + $0xa0] ss:$8 sps:$4 sm:$0xff]   ;;  %v1354_v25 = vld [vmem:[%s1608_s9 + $0x30] ss:$8 sps:$4 sm:$0xff]  }
  0x2f   : > { %v1355_v26 = vld [vmem:[%s1608_s9 + $0xb0] ss:$8 sps:$4 sm:$0xff]   ;;  %v1356_v27 = vld [vmem:[%s1608_s9 + $0x44] ss:$8 sps:$4 sm:$0xff]   ;;  %v1360_v29 = vld [vmem:[%s1608_s9 + $0x40] ss:$8 sps:$4 sm:$0xff]   ;;  %p1390_p2 = pnand %p1389_p1, %p1566_p3 }
  0x30   : > { %v1358_v28 = vld [vmem:[%s1608_s9 + $0xc4] ss:$8 sps:$4 sm:$0xff]   ;;  %v1361_v30 = vld [vmem:[%s1608_s9 + $0xc0] ss:$8 sps:$4 sm:$0xff]   ;;  %v1362_v31 = vld [vmem:[%s1608_s9 + $0x54] ss:$8 sps:$4 sm:$0xff]  }
  0x31   : > { %519 = vmatpush1.bf16.msra.mxu0 %v1325_v4  ;;  %766 = vmatpush1.bf16.msra.mxu1 %v1325_v4  ;;  %v1364_v32 = vld [vmem:[%s1608_s9 + $0xd4] ss:$8 sps:$4 sm:$0xff]   ;;  %v1366_v33 = vld [vmem:[%s1608_s9 + $0x50] ss:$8 sps:$4 sm:$0xff]   ;;  %v1368_v35 = vld [vmem:[%s1608_s9 + $0x64] ss:$8 sps:$4 sm:$0xff]   ;;  %p1391_p4 = pneg %p1390_p2 }
  0x32   : > { %520 = vmatprep.subr.bf16.mxu0 %v1483_v2  ;;  %767 = vmatprep.subr.bf16.mxu1 %v1483_v2  ;;  %v1367_v34 = vld [vmem:[%s1608_s9 + $0xd0] ss:$8 sps:$4 sm:$0xff]   ;;  %v1370_v36 = vld [vmem:[%s1608_s9 + $0xe4] ss:$8 sps:$4 sm:$0xff]   ;;  %v1372_v37 = vld [vmem:[%s1608_s9 + $0x60] ss:$8 sps:$4 sm:$0xff]  }
  0x33   : > { %v1373_v38 = vld [vmem:[%s1608_s9 + $0xe0] ss:$8 sps:$4 sm:$0xff]   ;;  %v1374_v39 = vld [vmem:[%s1608_s9 + $0x74] ss:$8 sps:$4 sm:$0xff]   ;;  %v1378_v41 = vld [vmem:[%s1608_s9 + $0x70] ss:$8 sps:$4 sm:$0xff]  }
  0x34   : > { %v1376_v40 = vld [vmem:[%s1608_s9 + $0xf4] ss:$8 sps:$4 sm:$0xff]   ;;  %v1379_v42 = vld [vmem:[%s1608_s9 + $0xf0] ss:$8 sps:$4 sm:$0xff]   ;;  %v1382_v46 = vld [vmem:[%s1613_s12 + $0x28] sm:$0xff]  }
  0x35   : > { %521 = vmatpush1.bf16.msra.mxu0 %v1326_v5  ;;  %768 = vmatpush1.bf16.msra.mxu1 %v1326_v5  ;;  %v1380_v43 = vld [vmem:[%s1613_s12 + $0x38] sm:$0xff]   ;;  %v1381_v45 = vld [vmem:[%s1613_s12 + $0x30] sm:$0xff]   ;;  %v1383_v47 = vld [vmem:[%s1613_s12 + $0x20] sm:$0xff]  }
  0x36   : > { %522 = vmatprep.subr.bf16.mxu0 %v1483_v2  ;;  %769 = vmatprep.subr.bf16.mxu1 %v1483_v2  ;;  %v1384_v48 = vld [vmem:[%s1613_s12 + $0x18] sm:$0xff]   ;;  %v1385_v49 = vld [vmem:[%s1613_s12 + $0x10] sm:$0xff]   ;;  %v1386_v50 = vld [vmem:[%s1613_s12 + $0x8] sm:$0xff]  }
  0x37   : > { %v1387_v51 = vld [vmem:[%s1613_s12] sm:$0xff]  }
  0x39   : > { %523 = vmatpush1.bf16.msra.mxu0 %v1327_v8  ;;  %770 = vmatpush1.bf16.msra.mxu1 %v1327_v8 }
  0x3a   : > { %524 = vmatprep.subr.bf16.mxu0 %v1483_v2  ;;  %771 = vmatprep.subr.bf16.mxu1 %v1483_v2 }
  0x3d   : > { %525 = vmatpush1.bf16.msra.mxu0 %v1328_v9  ;;  %772 = vmatpush1.bf16.msra.mxu1 %v1328_v9 }
  0x3e   : > { %526 = vmatprep.subr.bf16.mxu0 %v1483_v2  ;;  %773 = vmatprep.subr.bf16.mxu1 %v1483_v2 }
  0x41   : > { %527 = vmatpush1.bf16.msra.mxu0 %v1329_v10  ;;  %774 = vmatpush1.bf16.msra.mxu1 %v1329_v10 }
  0x42   : > { %528 = vmatprep.subr.bf16.mxu0 %v1483_v2  ;;  %775 = vmatprep.subr.bf16.mxu1 %v1483_v2 }
  0x45   : > { %529 = vmatpush1.bf16.msra.mxu0 %v1330_v11  ;;  %776 = vmatpush1.bf16.msra.mxu1 %v1330_v11 }
  0x46   : > { %544 = vmatprep.subr.bf16.mxu0 %v1483_v2  ;;  %791 = vmatprep.subr.bf16.mxu1 %v1483_v2 }
  0x49   : > { %545 = vmatpush2.bf16.msra.mxu0 %v1331_v12  ;;  %792 = vmatpush2.bf16.msra.mxu1 %v1331_v12 }
  0x4a   : > { %1227 = vmatprep.subr.bf16.mxu0 %v1484_v44 }
  0x4c   : > { %547 = vmatmul.mubr.bf16.vlgmr.msra.gmra.mxu0 %v1332_v13  ;;  %794 = vmatmul.mubr.bf16.vlgmr.msra.gmra.mxu1 %v1335_v14  ;;  %v1695_v14 = vld [vmem:[%s307_s26] ss:$0 sm:$0xff]  ;;  %s1486_s26 = smov [#allocation2]  }
  0x4d   : > { %1175 = vmatprep.mubr.msk.bf16.mxu0 %vm489_vm0, %v1338_v15  ;;  %1199 = vmatprep.mubr.msk.bf16.mxu1 %vm489_vm0, %v1340_v16  ;;  %s1392_s27 = sshll.u32 %s1486_s26, 4  ;;  %s1393_s27 = int_to_ptr.vmem [resolvable:$false] %s1392_s27 }
  0x4e   : > { %1228 = vmatpush3.bf16.msra.mxu0 %v1380_v43  ;;  %s1394_s8 = scalar_lea.vmem %s1393_s27, 32  ;;  %p1395_p5 = scmp.lt.s32.totalorder %s1742_s29, %s1393_s27 }
  0x4f   : > { %1229 = vmatprep.subr.bf16.mxu0 %v1484_v44  ;;  %p1396_p6 = scmp.lt.s32.totalorder %s1394_s8, %s1388_s22 }
  0x51   : > { %p1397_p7 = por %p1396_p6, %p1395_p5 }
  0x52   : > { %1230 = vmatpush3.bf16.msra.mxu0 %v1381_v45 }
  0x53   : > { %1231 = vmatprep.subr.bf16.mxu0 %v1484_v44  ;;  %p1398_p8 = pnand %p1397_p7, %p1391_p4 }
  0x54   : > { %555 = vmatmul.mubr.bf16.gmra.mxu0 %v1342_v17  ;;  %802 = vmatmul.mubr.bf16.gmra.mxu1 %v1343_v18 }
  0x55   : > { %1176 = vmatprep.mubr.msk.bf16.mxu0 %vm489_vm0, %v1344_v19  ;;  %1200 = vmatprep.mubr.msk.bf16.mxu1 %vm489_vm0, %v1346_v20 }
  0x56   : > { %1232 = vmatpush3.bf16.msra.mxu0 %v1382_v46 }
  0x57   : > { %1233 = vmatprep.subr.bf16.mxu0 %v1484_v44 }
  0x5a   : > { %1234 = vmatpush3.bf16.msra.mxu0 %v1383_v47 }
  0x5b   : > { %1235 = vmatprep.subr.bf16.mxu0 %v1484_v44 }
  0x5c   : > { %563 = vmatmul.mubr.bf16.gmra.mxu0 %v1348_v21  ;;  %810 = vmatmul.mubr.bf16.gmra.mxu1 %v1349_v22 }
  0x5d   : > { %1177 = vmatprep.mubr.msk.bf16.mxu0 %vm489_vm0, %v1350_v23  ;;  %1201 = vmatprep.mubr.msk.bf16.mxu1 %vm489_vm0, %v1352_v24 }
  0x5e   : > { %1236 = vmatpush3.bf16.msra.mxu0 %v1384_v48 }
  0x5f   : > { %1237 = vmatprep.subr.bf16.mxu0 %v1484_v44 }
  0x62   : > { %1238 = vmatpush3.bf16.msra.mxu0 %v1385_v49 }
  0x63   : > { %1239 = vmatprep.subr.bf16.mxu0 %v1484_v44 }
  0x64   : > { %571 = vmatmul.mubr.bf16.gmra.mxu0 %v1354_v25  ;;  %818 = vmatmul.mubr.bf16.gmra.mxu1 %v1355_v26 }
  0x65   : > { %1178 = vmatprep.mubr.msk.bf16.mxu0 %vm489_vm0, %v1356_v27  ;;  %1202 = vmatprep.mubr.msk.bf16.mxu1 %vm489_vm0, %v1358_v28 }
  0x66   : > { %1240 = vmatpush3.bf16.msra.mxu0 %v1386_v50 }
  0x67   : > { %1241 = vmatprep.subr.bf16.mxu0 %v1484_v44 }
  0x6a   : > { %1242 = vmatpush3.bf16.msra.mxu0 %v1387_v51 }
  0x6c   : > { %579 = vmatmul.mubr.bf16.gmra.mxu0 %v1360_v29  ;;  %826 = vmatmul.mubr.bf16.gmra.mxu1 %v1361_v30 }
  0x6d   : > { %1179 = vmatprep.mubr.msk.bf16.mxu0 %vm489_vm0, %v1362_v31  ;;  %1203 = vmatprep.mubr.msk.bf16.mxu1 %vm489_vm0, %v1364_v32 }
  0x74   : > { %587 = vmatmul.mubr.bf16.gmra.mxu0 %v1366_v33  ;;  %834 = vmatmul.mubr.bf16.gmra.mxu1 %v1367_v34 }
  0x75   : > { %1180 = vmatprep.mubr.msk.bf16.mxu0 %vm489_vm0, %v1368_v35  ;;  %1204 = vmatprep.mubr.msk.bf16.mxu1 %vm489_vm0, %v1370_v36 }
  0x7c   : > { %595 = vmatmul.mubr.bf16.gmra.mxu0 %v1372_v37  ;;  %842 = vmatmul.mubr.bf16.gmra.mxu1 %v1373_v38 }
  0x7d   : > { %1181 = vmatprep.mubr.msk.bf16.mxu0 %vm489_vm0, %v1374_v39  ;;  %1205 = vmatprep.mubr.msk.bf16.mxu1 %vm489_vm0, %v1376_v40 }
  0x84   : > { %603 = vmatmul.mubr.bf16.gmra.mxu0 %v1378_v41  ;;  %850 = vmatmul.mubr.bf16.gmra.mxu1 %v1379_v42 }
  0x85   : > { %1243 = vmatprep.mubr.msk.bf16.mxu0 %vm1485_vm1, %v1484_v44 }
 0x10c   : > { %v548_v52 = vpop.f32.mrf.mxu0  ;;  %v795_v53 = vpop.f32.mrf.mxu1 }
 0x10d   : > { %v549_v19 = vadd.f32 %v1695_v14, %v548_v52  ;;  %v796_v20 = vadd.f32 %v1695_v14, %v795_v53 }
 0x10e   : > { %v550_v54 = vpop.f32.mrf.mxu0  ;;  %v797_v55 = vpop.f32.mrf.mxu1 }
 0x10f   : > { %v611_v31 = vmax.f32 %v549_v19, 0.0  ;;  %v858_v32 = vmax.f32 %v796_v20, 0.0 }
 0x110   : > { %v551_v56 = vpop.f32.mrf.mxu0  ;;  %v798_v57 = vpop.f32.mrf.mxu1 }
 0x111   : > { %v552_v15 = vadd.f32 %v1695_v14, %v551_v56  ;;  %v799_v16 = vadd.f32 %v1695_v14, %v798_v57 }
 0x112   : > { %v553_v58 = vpop.f32.mrf.mxu0  ;;  %v800_v59 = vpop.f32.mrf.mxu1 }
 0x113   : > { %v612_v25 = vmax.f32 %v552_v15, 0.0  ;;  %v859_v26 = vmax.f32 %v799_v16, 0.0 }
 0x114   : > { %v556_v60 = vpop.f32.mrf.mxu0  ;;  %v803_v61 = vpop.f32.mrf.mxu1 }
 0x115   : > { %v557_v21 = vadd.f32 %v1695_v14, %v556_v60  ;;  %v804_v22 = vadd.f32 %v1695_v14, %v803_v61  ;;  %v627_v39 = vadd.f32 %v612_v25, %v611_v31  ;;  %v874_v40 = vadd.f32 %v859_v26, %v858_v32 }
 0x116   : > { %v558_v62 = vpop.f32.mrf.mxu0  ;;  %v805_v63 = vpop.f32.mrf.mxu1 }
 0x117   : > { %v613_v33 = vmax.f32 %v557_v21, 0.0  ;;  %v860_v34 = vmax.f32 %v804_v22, 0.0 }
 0x118   : > { %v559_v0 = vpop.f32.mrf.mxu0  ;;  %v806_v1 = vpop.f32.mrf.mxu1 }
 0x119   : > { %v560_v27 = vadd.f32 %v1695_v14, %v559_v0  ;;  %v807_v28 = vadd.f32 %v1695_v14, %v806_v1  ;;  %v628_v47 = vadd.f32 %v627_v39, %v613_v33  ;;  %v875_v48 = vadd.f32 %v874_v40, %v860_v34 }
 0x11a   : > { %v561_v2 = vpop.f32.mrf.mxu0  ;;  %v808_v3 = vpop.f32.mrf.mxu1 }
 0x11b   : > { %v614_v41 = vmax.f32 %v560_v27, 0.0  ;;  %v861_v42 = vmax.f32 %v807_v28, 0.0 }
 0x11c   : > { %v564_v4 = vpop.f32.mrf.mxu0  ;;  %v811_v5 = vpop.f32.mrf.mxu1 }
 0x11d   : > { %v565_v37 = vadd.f32 %v1695_v14, %v564_v4  ;;  %v812_v38 = vadd.f32 %v1695_v14, %v811_v5  ;;  %v629_v55 = vadd.f32 %v628_v47, %v614_v41  ;;  %v876_v56 = vadd.f32 %v875_v48, %v861_v42 }
 0x11e   : > { %v566_v6 = vpop.f32.mrf.mxu0  ;;  %v813_v7 = vpop.f32.mrf.mxu1 }
 0x11f   : > { %v615_v51 = vmax.f32 %v565_v37, 0.0  ;;  %v862_v52 = vmax.f32 %v812_v38, 0.0 }
 0x120   : > { %v567_v8 = vpop.f32.mrf.mxu0  ;;  %v814_v9 = vpop.f32.mrf.mxu1 }
 0x121   : > { %v568_v45 = vadd.f32 %v1695_v14, %v567_v8  ;;  %v815_v46 = vadd.f32 %v1695_v14, %v814_v9  ;;  %v630_v1 = vadd.f32 %v629_v55, %v615_v51  ;;  %v877_v2 = vadd.f32 %v876_v56, %v862_v52 }
 0x122   : > { %v569_v10 = vpop.f32.mrf.mxu0  ;;  %v816_v11 = vpop.f32.mrf.mxu1 }
 0x123   : > { %v616_v59 = vmax.f32 %v568_v45, 0.0  ;;  %v863_v60 = vmax.f32 %v815_v46, 0.0 }
 0x124   : > { %v572_v12 = vpop.f32.mrf.mxu0  ;;  %v819_v13 = vpop.f32.mrf.mxu1 }
 0x125   : > { %v573_v53 = vadd.f32 %v1695_v14, %v572_v12  ;;  %v820_v54 = vadd.f32 %v1695_v14, %v819_v13  ;;  %v631_v9 = vadd.f32 %v630_v1, %v616_v59  ;;  %v878_v10 = vadd.f32 %v877_v2, %v863_v60 }
 0x126   : > { %v574_v17 = vpop.f32.mrf.mxu0  ;;  %v821_v18 = vpop.f32.mrf.mxu1 }
 0x127   : > { %v617_v3 = vmax.f32 %v573_v53, 0.0  ;;  %v864_v4 = vmax.f32 %v820_v54, 0.0 }
 0x128   : > { %v575_v23 = vpop.f32.mrf.mxu0  ;;  %v822_v24 = vpop.f32.mrf.mxu1 }
 0x129   : > { %v576_v61 = vadd.f32 %v1695_v14, %v575_v23  ;;  %v823_v62 = vadd.f32 %v1695_v14, %v822_v24  ;;  %v632_v18 = vadd.f32 %v631_v9, %v617_v3  ;;  %v879_v19 = vadd.f32 %v878_v10, %v864_v4 }
 0x12a   : > { %v577_v29 = vpop.f32.mrf.mxu0  ;;  %v824_v30 = vpop.f32.mrf.mxu1 }
 0x12b   : > { %v618_v11 = vmax.f32 %v576_v61, 0.0  ;;  %v865_v12 = vmax.f32 %v823_v62, 0.0 }
 0x12c   : > { %v580_v35 = vpop.f32.mrf.mxu0  ;;  %v827_v36 = vpop.f32.mrf.mxu1 }
 0x12d   : > { %v581_v5 = vadd.f32 %v1695_v14, %v580_v35  ;;  %v828_v6 = vadd.f32 %v1695_v14, %v827_v36  ;;  %v633_v26 = vadd.f32 %v632_v18, %v618_v11  ;;  %v880_v27 = vadd.f32 %v879_v19, %v865_v12 }
 0x12e   : > { %v582_v43 = vpop.f32.mrf.mxu0  ;;  %v829_v44 = vpop.f32.mrf.mxu1 }
 0x12f   : > { %v619_v20 = vmax.f32 %v581_v5, 0.0  ;;  %v866_v21 = vmax.f32 %v828_v6, 0.0 }
 0x130   : > { %v583_v49 = vpop.f32.mrf.mxu0  ;;  %v830_v50 = vpop.f32.mrf.mxu1 }
 0x131   : > { %v584_v13 = vadd.f32 %v1695_v14, %v583_v49  ;;  %v831_v15 = vadd.f32 %v1695_v14, %v830_v50  ;;  %v634_v34 = vadd.f32 %v633_v26, %v619_v20  ;;  %v881_v35 = vadd.f32 %v880_v27, %v866_v21 }
 0x132   : > { %v585_v57 = vpop.f32.mrf.mxu0  ;;  %v832_v58 = vpop.f32.mrf.mxu1 }
 0x133   : > { %v620_v28 = vmax.f32 %v584_v13, 0.0  ;;  %v867_v29 = vmax.f32 %v831_v15, 0.0 }
 0x134   : > { %v588_v63 = vpop.f32.mrf.mxu0  ;;  %v835_v0 = vpop.f32.mrf.mxu1 }
 0x135   : > { %v589_v22 = vadd.f32 %v1695_v14, %v588_v63  ;;  %v836_v23 = vadd.f32 %v1695_v14, %v835_v0  ;;  %v635_v42 = vadd.f32 %v634_v34, %v620_v28  ;;  %v882_v43 = vadd.f32 %v881_v35, %v867_v29  ;;  %v914_v35 = vld [vmem:[%s315_s13] sm:$0x1] }
 0x136   : > { %v590_v7 = vpop.f32.mrf.mxu0  ;;  %v837_v8 = vpop.f32.mrf.mxu1 }
 0x137   : > { %v621_v36 = vmax.f32 %v589_v22, 0.0  ;;  %v868_v37 = vmax.f32 %v836_v23, 0.0 }
 0x138   : > { %v591_v16 = vpop.f32.mrf.mxu0  ;;  %v838_v17 = vpop.f32.mrf.mxu1 }
 0x139   : > { %v592_v30 = vadd.f32 %v1695_v14, %v591_v16  ;;  %v839_v31 = vadd.f32 %v1695_v14, %v838_v17  ;;  %v636_v50 = vadd.f32 %v635_v42, %v621_v36  ;;  %v883_v51 = vadd.f32 %v882_v43, %v868_v37  ;;  %v1003_v37 = vld [vmem:[%s1621_s7] sm:$0x1] }
 0x13a   : > { %v593_v24 = vpop.f32.mrf.mxu0  ;;  %v840_v25 = vpop.f32.mrf.mxu1 }
 0x13b   : > { %v622_v44 = vmax.f32 %v592_v30, 0.0  ;;  %v869_v45 = vmax.f32 %v839_v31, 0.0 }
 0x13c   : > { %v596_v32 = vpop.f32.mrf.mxu0  ;;  %v843_v33 = vpop.f32.mrf.mxu1 }
 0x13d   : > { %v597_v40 = vadd.f32 %v1695_v14, %v596_v32  ;;  %v844_v41 = vadd.f32 %v1695_v14, %v843_v33  ;;  %v637_v56 = vadd.f32 %v636_v50, %v622_v44  ;;  %v884_v57 = vadd.f32 %v883_v51, %v869_v45 }
 0x13e   : > { %v598_v38 = vpop.f32.mrf.mxu0  ;;  %v845_v39 = vpop.f32.mrf.mxu1 }
 0x13f   : > { %v623_v54 = vmax.f32 %v597_v40, 0.0  ;;  %v870_v55 = vmax.f32 %v844_v41, 0.0 }
 0x140   : > { %v599_v46 = vpop.f32.mrf.mxu0  ;;  %v846_v47 = vpop.f32.mrf.mxu1 }
 0x141   : > { %v600_v48 = vadd.f32 %v1695_v14, %v599_v46  ;;  %v847_v49 = vadd.f32 %v1695_v14, %v846_v47  ;;  %v638_v2 = vadd.f32 %v637_v56, %v623_v54  ;;  %v885_v3 = vadd.f32 %v884_v57, %v870_v55 }
 0x142   : > { %v601_v52 = vpop.f32.mrf.mxu0  ;;  %v848_v53 = vpop.f32.mrf.mxu1 }
 0x143   : > { %v624_v60 = vmax.f32 %v600_v48, 0.0  ;;  %v871_v61 = vmax.f32 %v847_v49, 0.0 }
 0x144   : > { %v604_v58 = vpop.f32.mrf.mxu0  ;;  %v851_v59 = vpop.f32.mrf.mxu1 }
 0x145   : > { %v605_v62 = vadd.f32 %v1695_v14, %v604_v58  ;;  %v852_v63 = vadd.f32 %v1695_v14, %v851_v59  ;;  %v639_v8 = vadd.f32 %v638_v2, %v624_v60  ;;  %v886_v9 = vadd.f32 %v885_v3, %v871_v61 }
 0x146   : > { %v606_v0 = vpop.f32.mrf.mxu0  ;;  %v853_v1 = vpop.f32.mrf.mxu1 }
 0x147   : > { %v625_v4 = vmax.f32 %v605_v62, 0.0  ;;  %v872_v5 = vmax.f32 %v852_v63, 0.0 }
 0x148   : > { %v607_v6 = vpop.f32.mrf.mxu0  ;;  %v854_v7 = vpop.f32.mrf.mxu1 }
 0x149   : > { %v608_v10 = vadd.f32 %v1695_v14, %v607_v6  ;;  %v855_v11 = vadd.f32 %v1695_v14, %v854_v7  ;;  %v640_v15 = vadd.f32 %v639_v8, %v625_v4  ;;  %v887_v16 = vadd.f32 %v886_v9, %v872_v5 }
 0x14a   : > { %v609_v12 = vpop.f32.mrf.mxu0  ;;  %v856_v13 = vpop.f32.mrf.mxu1 }
 0x14b   : > { %v626_v17 = vmax.f32 %v608_v10, 0.0  ;;  %v873_v18 = vmax.f32 %v855_v11, 0.0 }
 0x14d   : > { %v641_v19 = vadd.f32 %v640_v15, %v626_v17  ;;  %v888_v20 = vadd.f32 %v887_v16, %v873_v18 }
 0x14f   : > { %v642_v21 = vrot.slane %v641_v19, 4  ;;  %v889_v22 = vrot.slane %v888_v20, 4 }
 0x151   : > { %v643_v23 = vadd.f32 %v642_v21, %v641_v19  ;;  %v890_v24 = vadd.f32 %v889_v22, %v888_v20 }
 0x153   : > { %v644_v25 = vrot.slane %v643_v23, 2  ;;  %v891_v26 = vrot.slane %v890_v24, 2 }
 0x155   : > { %v645_v27 = vadd.f32 %v644_v25, %v643_v23  ;;  %v892_v14 = vadd.f32 %v891_v26, %v890_v24 }
 0x157   : > { %v646_v28 = vrot.slane %v645_v27, 1  ;;  %v893_v29 = vrot.slane %v892_v14, 1 }
 0x159   : > { %v647_v30 = vadd.f32 %v646_v28, %v645_v27  ;;  %v894_v31 = vadd.f32 %v893_v29, %v892_v14 }
 0x15b   : > { %v895_v32 = vadd.f32 %v894_v31, %v647_v30 }
 0x15d   : > { %v896_v33 = vmul.f32 0.00390625, %v895_v32 }
 0x15f   : > { %v897_v34 = vpack.c.bf16 %v896_v33, %v896_v33 }
 0x161   : > { %1244 = vmatmul.mubr.bf16.vlgmr.msra.gmra.mxu0 %v897_v34 }
 0x221   : > { %v997_v36 = vpop.f32.mrf.mxu0 }
 0x222   : > { %v998_v38 = vadd.f32 %v997_v36, %v914_v35 }
 0x223   : > { %v1245_v39 = vpop.f32.mrf.mxu0 }
 0x224   : > { %v1004_v40 = vadd.f32 %v1003_v37, %v998_v38 }
 0x225   : > { %v1000_v41 = vpop.f32.mrf.mxu0 }
 0x226   : > { %1005 = vst [vmem:[%s1621_s7] sm:$0x1] %v1004_v40 }
 0x227   : > { %v1246_v42 = vpop.f32.mrf.mxu0 }
 0x228   : > { %1401 = shalt.err (!%p1398_p8)
}
 0x229   : > { %s1402_s12 = scalar_lea.hbm %s1740_s10, 16  ;;  %s1406_s13 = scalar_lea.hbm %s1800_s5, 32 }
 0x22a   : > { %p1403_p10 = scmp.ne.s32.totalorder %s1740_s10, %s1402_s12  ;;  %p1407_p13 = scmp.lt.s32.totalorder %s1740_s10, %s1800_s5 }
 0x22b   : > { %p1408_p0 = scmp.lt.s32.totalorder %s1406_s13, %s1402_s12 }
 0x22c   : > { %p1404_p11 = pnand %p1403_p10, %p1566_p3 }
 0x22d   : > { %p1409_p1 = por %p1408_p0, %p1407_p13 }
 0x22e   : > { %p1405_p12 = pneg %p1404_p11 }
 0x230   : > { %p1410_p2 = pnand %p1409_p1, %p1405_p12 }
 0x232   : > { %1413 = shalt.err (!%p1410_p2)
}
 0x233   : > { %1248 = dma.vmem_to_hbm [thread:$0]  (%p1566_p3), %s1742_s29, 16, %s1740_s10, %s1007_s14  }
 0x234 PF: > { %p1254_p4 = scmp.ge.s32.totalorder %s1480_s25, 2  ;;  %s1031_s21 = sand.u32 1, %s1452_s18  }
 0x235   : > { %s1032_s23 = scalar_lea.sflag [#allocation3], %s1031_s21 }
 0x236   : > { %p1251_p5 = pnand %p1254_p4, %p1576_p9 }
 0x238   : > { %p1252_p6 = pneg %p1251_p5 }
 0x23a   : > { %1447 = dma.done.wait (%p1252_p6), %s1032_s23, 16  }
 0x23b   : > { %1449 = vsyncadd (%p1252_p6), %s1032_s23, 4294967280  ;;  %s18_s25 = sadd.s32 1, %s1480_s25   ;;  %s1818_s30 = sld [smem:[#allocation5_spill]] }
 0x23c   : > { %p15_p7 = scmp.ge.s32.totalorder %s18_s25, 6   ;;  %s1819_s20 = sld [smem:[#allocation11_spill]] }
 0x23d   : > { %s1820_s21 = sld [smem:[#allocation6_spill]]  ;;  %s1824_s18 = smov %s1456_s19 }
 0x23e   : > { %s1821_s22 = sld [smem:[#allocation7_spill]]  ;;  %17 = sbr.rel (!%p15_p7) target bundleno = 5 (0x5), region = 91 }
 0x23f   : > { %s1822_s23 = sld [smem:[#allocation8_spill]] }
 0x240   : > { %s1823_s24 = sld [smem:[#allocation9_spill]] }
 0x241   : > { %s1825_s19 = smov %s1818_s30 }
 0x243   :  { %1036 = vsyncpa [#allocation3], 1 }
 0x244   :  { %1038 = vsyncpa [#allocation3 + $0x1], 1 }

</bundles_post_ra>
